<compile_context>
chip_gen: v7x
topology: tpu7x:2x2x1
jax: 0.10.0
libtpu: 0.0.40
codegen_flags: <defaults>
</compile_context>

<pallas_src>
import jax
import jax.numpy as jnp
from jax.experimental import pallas as pl
from jax.experimental.pallas import tpu as pltpu


def mlp_kernel(x_ref, w1_ref, b1_ref, w2_ref, b2_ref, w3t_ref, b3t_ref, o_ref):
    # Three matmuls + ReLUs fused, all operands resident in VMEM.
    x = x_ref[...]                                                      # (tile_b, D_in)
    h1 = jnp.dot(x, w1_ref[...], preferred_element_type=jnp.float32) + b1_ref[...]
    h1 = jnp.maximum(h1, 0.0)                                           # ReLU
    h2 = jnp.dot(h1, w2_ref[...], preferred_element_type=jnp.float32) + b2_ref[...]
    h2 = jnp.maximum(h2, 0.0)                                           # ReLU  (tile_b, H2)

    # fc3 transposed so batch lands on lanes:
    #   (D_out_pad8, H2) . (tile_b, H2)^T  ->  (D_out_pad8, tile_b)
    # (contraction on dim 1 of both operands; no materialized transpose needed).
    out_t = jax.lax.dot_general(
        w3t_ref[...], h2,
        dimension_numbers=(((1,), (1,)), ((), ())),
        preferred_element_type=jnp.float32)
    o_ref[...] = (out_t + b3t_ref[...]).astype(o_ref.dtype)             # lane-dense (8, tile_b) store


def _round_up(n, m):
    return ((n + m - 1) // m) * m


def _mlp_xla(x, p):
    # Fused plain-XLA path for tiny batches (kernel launch overhead would dominate).
    h1 = jnp.maximum(x @ p["w1"] + p["b1"], 0.0)
    h2 = jnp.maximum(h1 @ p["w2"] + p["b2"], 0.0)
    return h2 @ p["w3"] + p["b3"]


def mlp_forward(x, params, *, tile_b=1024, force_pallas=False, min_pallas_batch=512):
    """x: (B, D_in). params: w1,b1,w2,b2,w3,b3 with weights (in, out), biases (1, out).

    Returns (B, D_out) float32.
    """
    B, D_in = x.shape
    H1 = params["w1"].shape[1]
    H2 = params["w2"].shape[1]
    D_out = params["w3"].shape[1]

    x = x.astype(jnp.float32)

    # Tiny-batch fallback: below a few hundred rows the pallas_call launch, the pad and the
    # output slice dominate (<100 KFLOP of real work); a fused jnp path wins everywhere.
    if not force_pallas and B <= min_pallas_batch:
        return _mlp_xla(x, params).astype(jnp.float32)

    # ---------------- batch tiling ----------------
    B8 = _round_up(B, 8)                     # sublane alignment for the x tile
    if B8 <= tile_b:
        tile, steps = B8, 1                  # single step; never over-pad tiny batches
    else:
        steps = -(-B8 // tile_b)
        if steps % 2:
            steps += 1                       # even step count -> both v7x TensorCores busy
        tile = _round_up(-(-B8 // steps), 128)   # lane-dense output tiles (batch on lanes)
    B_pad = steps * tile

    x_p = x if B_pad == B else jnp.pad(x, ((0, B_pad - B), (0, 0)))
    # NOTE: zero-padded rows compute ReLU(b)-propagated garbage; it is sliced off below and
    # must never be read from the padded region.

    # ------------- repack fc3 (batch on lanes) -------------
    D_out_p = _round_up(D_out, 8)            # pad real outputs to one sublane tile (8 rows)
    w3t = jnp.zeros((D_out_p, H2), jnp.float32).at[:D_out, :].set(
        params["w3"].astype(jnp.float32).T)
    b3t = jnp.zeros((D_out_p, 1), jnp.float32).at[:D_out, :].set(
        params["b3"].astype(jnp.float32).T)

    def const(shape):
        # Full-array block with a constant block index: fetched once, no re-DMA per step.
        zeros = (0,) * len(shape)
        return pl.BlockSpec(shape, lambda i: zeros)

    flops = 2 * B_pad * (D_in * H1 + H1 * H2 + H2 * D_out_p)
    bytes_accessed = 4 * (
        B_pad * D_in                          # x
        + D_in * H1 + H1                      # fc1
        + H1 * H2 + H2                        # fc2
        + D_out_p * H2 + D_out_p              # fc3 (transposed, 8-row padded)
        + D_out_p * B_pad                     # out (repacked: 32 B/row, not 512 B/row)
    )

    out_t = pl.pallas_call(
        mlp_kernel,
        out_shape=jax.ShapeDtypeStruct((D_out_p, B_pad), jnp.float32),
        grid_spec=pltpu.PrefetchScalarGridSpec(
            num_scalar_prefetch=0,
            grid=(steps,),
            in_specs=[
                pl.BlockSpec((tile, D_in), lambda i: (i, 0)),   # x tile over batch
                const((D_in, H1)), const((1, H1)),
                const((H1, H2)), const((1, H2)),
                const((D_out_p, H2)), const((D_out_p, 1)),
            ],
            out_specs=pl.BlockSpec((D_out_p, tile), lambda i: (0, i)),
        ),
        compiler_params=pltpu.CompilerParams(
            dimension_semantics=("parallel",),   # batch axis shards across TCs on v7x
        ),
        cost_estimate=pl.CostEstimate(
            flops=flops, transcendentals=0, bytes_accessed=bytes_accessed),
    )(x_p,
      params["w1"].astype(jnp.float32), params["b1"].astype(jnp.float32),
      params["w2"].astype(jnp.float32), params["b2"].astype(jnp.float32),
      w3t, b3t)

    # Strip row padding / batch padding and restore the (B, D_out) orientation.
    return out_t[:D_out, :B].T


def init_params(key, input_size, hidden_layers=(32, 16), output_size=1):
    """Deterministic synthetic init (PyTorch-like uniform fan-in scaling)."""
    sizes = [input_size, hidden_layers[0], hidden_layers[1], output_size]
    params = {}
    for idx in range(3):
        fan_in, fan_out = sizes[idx], sizes[idx + 1]
        key, kw, kb = jax.random.split(key, 3)
        bound = 1.0 / (fan_in ** 0.5)
        params[f"w{idx + 1}"] = jax.random.uniform(
            kw, (fan_in, fan_out), jnp.float32, minval=-bound, maxval=bound)
        params[f"b{idx + 1}"] = jax.random.uniform(
            kb, (1, fan_out), jnp.float32, minval=-bound, maxval=bound)
    return params


def mlp_reference(x, p):
    h1 = jnp.maximum(x @ p["w1"] + p["b1"], 0.0)
    h2 = jnp.maximum(h1 @ p["w2"] + p["b2"], 0.0)
    return h2 @ p["w3"] + p["b3"]


if __name__ == "__main__":
    key = jax.random.PRNGKey(0)
    kx, kp, kx2 = jax.random.split(key, 3)

    # Small shapes consistent with the PyTorch module.
    batch, input_size = 8, 16
    x = jax.random.normal(kx, (batch, input_size), dtype=jnp.float32)
    params = init_params(kp, input_size, hidden_layers=(32, 16), output_size=1)
    ref = mlp_reference(x, params)

    # 1) Small batch pushed through the Pallas kernel (forced past the tiny-batch fallback).
    out = jax.block_until_ready(mlp_forward(x, params, force_pallas=True))
    assert out.shape == (batch, 1)
    assert jnp.allclose(out, ref, atol=1e-5, rtol=1e-5), "mismatch vs reference (pallas, small batch)"

    # 2) Same small batch through the default path (plain-XLA fallback).
    out_fb = jax.block_until_ready(mlp_forward(x, params))
    assert jnp.allclose(out_fb, ref, atol=1e-5, rtol=1e-5), "mismatch vs reference (xla fallback)"

    # 3) Large ragged batch: multi-step, even grid step count, lane-dense repacked output.
    batch2 = 2500
    x2 = jax.random.normal(kx2, (batch2, input_size), dtype=jnp.float32)
    out2 = jax.block_until_ready(mlp_forward(x2, params))
    ref2 = mlp_reference(x2, params)
    assert out2.shape == (batch2, 1)
    assert jnp.allclose(out2, ref2, atol=2e-5, rtol=1e-5), "mismatch vs reference (large ragged batch)"

    print("KERNEL_OK")
</pallas_src>

<mosaic_0001>
module attributes {stable_mosaic.version = 11 : i64} {
  func.func @mlp_kernel(%arg0: i32, %arg1: memref<8x16xf32, #tpu.memory_space<vmem>>, %arg2: memref<16x32xf32, #tpu.memory_space<vmem>>, %arg3: memref<1x32xf32, #tpu.memory_space<vmem>>, %arg4: memref<32x16xf32, #tpu.memory_space<vmem>>, %arg5: memref<1x16xf32, #tpu.memory_space<vmem>>, %arg6: memref<8x16xf32, #tpu.memory_space<vmem>>, %arg7: memref<8x1xf32, #tpu.memory_space<vmem>>, %arg8: memref<8x8xf32, #tpu.memory_space<vmem>>) attributes {dimension_semantics = [#tpu.dimension_semantics<parallel>], iteration_bounds = array<i64: 1>, scalar_prefetch = 0 : i64, scratch_operands = 0 : i64, tpu.core_type = #tpu.core_type<tc>, window_params = [{transform_indices = @transform_0, window_bounds = array<i64: 8, 16>}, {pipeline_mode = #tpu.pipeline_mode<synchronous>, transform_indices = @transform_1, window_bounds = array<i64: 16, 32>}, {pipeline_mode = #tpu.pipeline_mode<synchronous>, transform_indices = @transform_2, window_bounds = array<i64: 1, 32>}, {pipeline_mode = #tpu.pipeline_mode<synchronous>, transform_indices = @transform_3, window_bounds = array<i64: 32, 16>}, {pipeline_mode = #tpu.pipeline_mode<synchronous>, transform_indices = @transform_4, window_bounds = array<i64: 1, 16>}, {pipeline_mode = #tpu.pipeline_mode<synchronous>, transform_indices = @transform_5, window_bounds = array<i64: 8, 16>}, {pipeline_mode = #tpu.pipeline_mode<synchronous>, transform_indices = @transform_6, window_bounds = array<i64: 8, 1>}, {transform_indices = @transform_7, window_bounds = array<i64: 8, 8>}]} {
    %c0 = arith.constant 0 : index
    %c0_0 = arith.constant 0 : index
    %0 = vector.load %arg1[%c0, %c0_0] : memref<8x16xf32, #tpu.memory_space<vmem>>, vector<8x16xf32>
    %c0_1 = arith.constant 0 : index
    %c0_2 = arith.constant 0 : index
    %1 = vector.load %arg2[%c0_1, %c0_2] : memref<16x32xf32, #tpu.memory_space<vmem>>, vector<16x32xf32>
    %cst = arith.constant dense<0.000000e+00> : vector<8x32xf32>
    %2 = tpu.matmul %0, %1, %cst {dimension_numbers = #tpu.dot_dimension_numbers<[1], [0], [0], [1], [0, 0, 1, 1], [], []>} : vector<8x16xf32>, vector<16x32xf32>, vector<8x32xf32> -> vector<8x32xf32>
    %c0_3 = arith.constant 0 : index
    %c0_4 = arith.constant 0 : index
    %3 = vector.load %arg3[%c0_3, %c0_4] : memref<1x32xf32, #tpu.memory_space<vmem>>, vector<1x32xf32>
    %4 = vector.broadcast %3 : vector<1x32xf32> to vector<8x32xf32>
    %5 = arith.addf %2, %4 : vector<8x32xf32>
    %cst_5 = arith.constant 0.000000e+00 : f32
    %6 = vector.broadcast %cst_5 : f32 to vector<8x32xf32>
    %7 = arith.maximumf %5, %6 : vector<8x32xf32>
    %c0_6 = arith.constant 0 : index
    %c0_7 = arith.constant 0 : index
    %8 = vector.load %arg4[%c0_6, %c0_7] : memref<32x16xf32, #tpu.memory_space<vmem>>, vector<32x16xf32>
    %cst_8 = arith.constant dense<0.000000e+00> : vector<8x16xf32>
    %9 = tpu.matmul %7, %8, %cst_8 {dimension_numbers = #tpu.dot_dimension_numbers<[1], [0], [0], [1], [0, 0, 1, 1], [], []>} : vector<8x32xf32>, vector<32x16xf32>, vector<8x16xf32> -> vector<8x16xf32>
    %c0_9 = arith.constant 0 : index
    %c0_10 = arith.constant 0 : index
    %10 = vector.load %arg5[%c0_9, %c0_10] : memref<1x16xf32, #tpu.memory_space<vmem>>, vector<1x16xf32>
    %11 = vector.broadcast %10 : vector<1x16xf32> to vector<8x16xf32>
    %12 = arith.addf %9, %11 : vector<8x16xf32>
    %cst_11 = arith.constant 0.000000e+00 : f32
    %13 = vector.broadcast %cst_11 : f32 to vector<8x16xf32>
    %14 = arith.maximumf %12, %13 : vector<8x16xf32>
    %c0_12 = arith.constant 0 : index
    %c0_13 = arith.constant 0 : index
    %15 = vector.load %arg6[%c0_12, %c0_13] : memref<8x16xf32, #tpu.memory_space<vmem>>, vector<8x16xf32>
    %cst_14 = arith.constant dense<0.000000e+00> : vector<8x8xf32>
    %16 = tpu.matmul %15, %14, %cst_14 {dimension_numbers = #tpu.dot_dimension_numbers<[1], [1], [0], [0], [0, 0, 1, 0], [], []>} : vector<8x16xf32>, vector<8x16xf32>, vector<8x8xf32> -> vector<8x8xf32>
    %c0_15 = arith.constant 0 : index
    %c0_16 = arith.constant 0 : index
    %17 = vector.load %arg7[%c0_15, %c0_16] : memref<8x1xf32, #tpu.memory_space<vmem>>, vector<8x1xf32>
    %18 = vector.broadcast %17 : vector<8x1xf32> to vector<8x8xf32>
    %19 = arith.addf %16, %18 : vector<8x8xf32>
    %c0_17 = arith.constant 0 : index
    %c0_18 = arith.constant 0 : index
    %20 = vector.load %arg8[%c0_17, %c0_18] : memref<8x8xf32, #tpu.memory_space<vmem>>, vector<8x8xf32>
    tpu.vector_store %arg8[%c0_17, %c0_18], %19 {strides = array<i32>} : memref<8x8xf32, #tpu.memory_space<vmem>>, vector<8x8xf32>,
    return
  }
  func.func @transform_0(%arg0: i32) -> (i32, i32) {
    %c0_i32 = arith.constant 0 : i32
    %c0_i32_0 = arith.constant 0 : i32
    return %arg0, %c0_i32 : i32, i32
  }
  func.func @transform_1(%arg0: i32) -> (i32, i32) {
    %c0_i32 = arith.constant 0 : i32
    %c0_i32_0 = arith.constant 0 : i32
    %c0_i32_1 = arith.constant 0 : i32
    return %c0_i32, %c0_i32_0 : i32, i32
  }
  func.func @transform_2(%arg0: i32) -> (i32, i32) {
    %c0_i32 = arith.constant 0 : i32
    %c0_i32_0 = arith.constant 0 : i32
    %c0_i32_1 = arith.constant 0 : i32
    return %c0_i32, %c0_i32_0 : i32, i32
  }
  func.func @transform_3(%arg0: i32) -> (i32, i32) {
    %c0_i32 = arith.constant 0 : i32
    %c0_i32_0 = arith.constant 0 : i32
    %c0_i32_1 = arith.constant 0 : i32
    return %c0_i32, %c0_i32_0 : i32, i32
  }
  func.func @transform_4(%arg0: i32) -> (i32, i32) {
    %c0_i32 = arith.constant 0 : i32
    %c0_i32_0 = arith.constant 0 : i32
    %c0_i32_1 = arith.constant 0 : i32
    return %c0_i32, %c0_i32_0 : i32, i32
  }
  func.func @transform_5(%arg0: i32) -> (i32, i32) {
    %c0_i32 = arith.constant 0 : i32
    %c0_i32_0 = arith.constant 0 : i32
    %c0_i32_1 = arith.constant 0 : i32
    return %c0_i32, %c0_i32_0 : i32, i32
  }
  func.func @transform_6(%arg0: i32) -> (i32, i32) {
    %c0_i32 = arith.constant 0 : i32
    %c0_i32_0 = arith.constant 0 : i32
    %c0_i32_1 = arith.constant 0 : i32
    return %c0_i32, %c0_i32_0 : i32, i32
  }
  func.func @transform_7(%arg0: i32) -> (i32, i32) {
    %c0_i32 = arith.constant 0 : i32
    %c0_i32_0 = arith.constant 0 : i32
    return %c0_i32, %arg0 : i32, i32
  }
}

</mosaic_0001>

<bundles_post_ra>
// kernel: tpu_custom_call.1
= control target key start
LH: loop header
LB: loop body
LE: loop exit
PB: predicated region body
PF: predicated region fallthrough
CT: control target
= control target key end

     0   :  { %v375_v2 = vmov 0.0|0.0   ;;  %vm376_vm0 = vmmov 0   ;;  %v377_v4 = vmov 0.0   ;;  %s471_s0 = inlined_call_operand.vmem [shape: f32[8,16], index: 0, kind: input, shape index: {}]   ;;  %s472_s1 = inlined_call_operand.vmem [shape: f32[16,32], index: 1, kind: input, shape index: {}]   ;;  %s473_s2 = inlined_call_operand.vmem [shape: f32[1,32], index: 2, kind: input, shape index: {}]   ;;  %s474_s3 = inlined_call_operand.vmem [shape: f32[32,16], index: 3, kind: input, shape index: {}]   ;;  %s475_s4 = inlined_call_operand.vmem [shape: f32[1,16], index: 4, kind: input, shape index: {}]   ;;  %s476_s5 = inlined_call_operand.vmem [shape: f32[8,16], index: 5, kind: input, shape index: {}]   ;;  %s477_s6 = inlined_call_operand.vmem [shape: f32[8,1], index: 6, kind: input, shape index: {}]   ;;  %s478_s7 = inlined_call_operand.hbm [shape: f32[8,8], index: 7, kind: output, shape index: {}]  }
   0x1   :  { %v28_v0 = vld [vmem:[%s472_s1] sm:$0xff]  ;;  %v29_v1 = vld [vmem:[%s472_s1 + $0x8] sm:$0xff]  ;;  %336 = vmatprep.subr.bf16.mxu0 %v375_v2  ;;  %317 = vmatprep.mubr.msk.f32.mxu0 %vm376_vm0, %v377_v4 }
   0x2   :  { %v337_v3 = vpack.c.bf16 %v29_v1, %v28_v0  ;;  %v112_v5 = vld [vmem:[%s474_s3] sm:$0xff]  ;;  %v113_v6 = vld [vmem:[%s474_s3 + $0x8] sm:$0xff]  ;;  %339 = vmatprep.subr.bf16.mxu1 %v375_v2  ;;  %328 = vmatprep.mubr.msk.f32.mxu1 %vm376_vm0, %v377_v4 }
   0x3   :  { %v340_v7 = vpack.c.bf16 %v113_v6, %v112_v5 }
   0x4   :  { %12 = vsyncpa [#allocation3], 0  ;;  %338 = vmatpush3.bf16.msra.mxu0 %v337_v3  ;;  %v27_v8 = vld [vmem:[%s471_s0] sm:$0xff]  ;;  %vm37_vm1 = vcmask 130048   ;;  %v114_v9 = vld [vmem:[%s474_s3 + $0x10] sm:$0xff]  ;;  %vm123_vm2 = vcmask 261120  }
   0x5   :  { %341 = vmatpush3.bf16.msra.mxu1 %v340_v7  ;;  %331 = vmatprep.subr.mxu0 %v377_v4  ;;  %v115_v10 = vld [vmem:[%s474_s3 + $0x18] sm:$0xff]  ;;  %v297_v12 = vld [vmem:[%s473_s2] ss:$0 sm:$0xff]  ;;  %v378_v18 = vmov 0   ;;  %vm281_vm3 = vcmask 64512  }
   0x6   :  { %342 = vmatprep.subr.bf16.mxu1 %v375_v2  ;;  %v343_v11 = vpack.c.bf16 %v115_v10, %v114_v9  ;;  %v199_v17 = vld [vmem:[%s477_s6] sm:$0xff]  ;;  %350 = vset.pattern.permute.xlu0 %v378_v18  ;;  %s379_s6 = smov [#allocation2]  }
   0x7   :  { %318 = vmatmul.mubr.msk.f32.vlgmr.msra.gmra.mrb[0].mxu0 %vm37_vm1, %v27_v8  ;;  %202 = vperm.xlu0 %350, %v199_v17   ;;  %v299_v19 = vld [vmem:[%s475_s4] ss:$0 sm:$0xff]  ;;  %s289_s19 = sshll.u32 %s379_s6, 4  ;;  %s290_s19 = int_to_ptr.vmem [resolvable:$true] %s289_s19 }
   0x8   :  { %333 = vmatprep.mubr.msk.f32.mxu0 %vm376_vm0, %v377_v4  ;;  %v198_v24 = vld [vmem:[%s476_s5] sm:$0xff]  ;;  %s351_s4 = scalar_lea.vmem %s290_s19, 128  ;;  %p356_p1 = scmp.lt.s32.totalorder %s290_s19, %s290_s19 }
   0x9   :  { %344 = vmatpush3.bf16.msra.mxu1 %v343_v11  ;;  %p352_p0 = scmp.ne.s32.totalorder %s290_s19, %s351_s4  ;;  %p357_p2 = scmp.lt.s32.totalorder %s351_s4, %s351_s4 }
   0xb   :  { %p358_p3 = por %p357_p2, %p356_p1 }
   0xd   :  { %p359_p4 = pnand %p358_p3, %p352_p0 }
  0x86   :  { %v203_v25 = vpop.permute.xlu0 %202 }
  0xda   :  { %v107_v13 = vpop.f32.mrb[0].mxu0 }
  0xdb   :  { %v108_v14 = vadd.f32 %v297_v12, %v107_v13  ;;  %v319_v15 = vpop.f32.mrb[1].mxu0 }
  0xdd   :  { %v111_v16 = vmax.f32 %v108_v14, 0.0 }
  0xdf   :  { %329 = vmatmul.mubr.msk.f32.vlgmr.msra.gmra.mrb[0].mxu1 %vm123_vm2, %v111_v16 }
 0x1b2   :  { %v193_v20 = vpop.f32.mrb[0].mxu1 }
 0x1b3   :  { %v194_v21 = vadd.f32 %v299_v19, %v193_v20  ;;  %v330_v22 = vpop.f32.mrb[1].mxu1 }
 0x1b5   :  { %v197_v23 = vmax.f32 %v194_v21, 0.0 }
 0x1b7   :  { %332 = vmatpush3.xpose.msk.msra.mxu0 %vm37_vm1, %v197_v23 }
 0x1ba   :  { %334 = vmatmul.mubr.msk.f32.vlgmr.msra.gmra.mrb[2].mxu0 %vm37_vm1, %v198_v24 }
 0x28d   :  { %v277_v26 = vpop.f32.mrb[2].mxu0 }
 0x28e   :  { %v278_v27 = vadd.f32 %v277_v26, %v203_v25  ;;  %v335_v28 = vpop.f32.mrb[3].mxu0 }
 0x290   :  { %282 = vst.msk [vmem:[#allocation2] sm:$0xff] %vm281_vm3, %v278_v27 }
 0x291   :  { %362 = shalt.err (!%p359_p4)
}
 0x292   :  { %s363_s21 = scalar_lea.hbm %s478_s7, 128 }
 0x293   :  { %p364_p5 = scmp.ne.s32.totalorder %s478_s7, %s363_s21  ;;  %p367_p6 = scmp.lt.u32.totalorder %s363_s21, %s478_s7 }
 0x295   :  { %p369_p7 = pnand %p367_p6, %p364_p5 }
 0x297   :  { %372 = shalt.err (!%p369_p7)
}
 0x298   :  { %292 = dma.vmem_to_hbm [thread:$0]  %s290_s19, 128, %s478_s7, [#allocation3]  }
 0x299   :  { %373 = dma.done.wait [#allocation3], 128  }
 0x29a   :  { %374 = vsyncadd [#allocation3], 4294967168 }
 0x29b   :  { %296 = vsyncpa [#allocation3], 1 }

</bundles_post_ra>
